<compile_context>
chip_gen: v7x
topology: tpu7x:2x2x1
jax: 0.10.0
libtpu: 0.0.40
codegen_flags: <defaults>
</compile_context>

<pallas_src>
import jax
import jax.numpy as jnp
from jax.experimental import pallas as pl
from jax.experimental.pallas import tpu as pltpu

_MIB = 1024 * 1024


def _round_up(x, m):
    return (x + m - 1) // m * m


def _vmem_budget():
    """Return (vmem_limit_bytes, data_budget_bytes), generation aware, v7x-safe fallback."""
    try:
        info = pltpu.get_tpu_info()
        cap = int(getattr(info, "vmem_capacity_bytes", 64 * _MIB))
    except Exception:
        cap = 64 * _MIB  # v7x per-TensorCore VMEM; safe lower bound for all generations
    cap = min(max(cap, 32 * _MIB), 128 * _MIB)
    vmem_limit = min(cap - 16 * _MIB, 112 * _MIB)   # ~48 MiB on v7x, ~112 MiB on v5e/v6e
    data_budget = max(vmem_limit - 6 * _MIB, 8 * _MIB)
    return vmem_limit, data_budget


def _choose_phase1_tiles(M, K_pad, C_pad, budget):
    """Pick (tile_m, tile_k). Prefer tile_k == K_pad (resident weights), then big tile_m."""
    m_ceil = _round_up(max(M, 1), 8)
    tk_cands = [K_pad] + [t for t in (1024, 512, 256, 128) if t < K_pad and K_pad % t == 0]
    tm_cands = [1024, 512, 384, 256, 128, 64, 32, 16, 8]
    for tk in tk_cands:
        for tm in tm_cands:
            tm_eff = _round_up(min(tm, m_ceil), 8)
            need = (2 * tm_eff * tk * 2          # patches block, bf16, double buffered
                    + 2 * tk * C_pad * 2         # weight block, bf16, double buffered
                    + 2 * tm_eff * C_pad * 2     # bf16 y output block, double buffered
                    + 2 * 8 * C_pad * 4          # partial-stats output block
                    + tm_eff * C_pad * 4)        # f32 accumulator scratch
            if need <= budget:
                return tm_eff, tk
    return 8, 128


# ---------------------------------------------------------------------------
# Phase 1: tiled GEMM (bf16 MXU, f32 scratch accumulator) + per-M-tile partial stats.
# M axis is "parallel" (v7x megacore); K axis is "arbitrary" (reduction, innermost).
# ---------------------------------------------------------------------------
def _gemm_stats_kernel(p_ref, w_ref, y_ref, ps_ref, acc_ref):
    k = pl.program_id(1)
    nk = pl.num_programs(1)

    @pl.when(k == 0)
    def _():
        acc_ref[...] = jnp.zeros_like(acc_ref)

    acc_ref[...] += jnp.dot(p_ref[...], w_ref[...],
                            preferred_element_type=jnp.float32)

    # Last K step for this M tile: down-cast the f32 accumulator to the bf16 intermediate
    # and emit this tile's BN partial statistics (sum, sum of squares).  Zero-padded rows
    # contribute nothing.  The reduce runs on VPU/XLU slots idle under the MXU/DMA steady
    # state, so it is effectively free filler.
    @pl.when(k == nk - 1)
    def _():
        acc = acc_ref[...]
        y_ref[...] = acc.astype(y_ref.dtype)
        ps_ref[...] = jnp.zeros_like(ps_ref)
        ps_ref[0:1, :] = jnp.sum(acc, axis=0, keepdims=True)
        ps_ref[1:2, :] = jnp.sum(acc * acc, axis=0, keepdims=True)


# ---------------------------------------------------------------------------
# Phase 2: normalize + ReLU (fully parallel over M tiles), bf16 in -> f32 out.
# ---------------------------------------------------------------------------
def _norm_relu_kernel(y_ref, st_ref, o_ref):
    scale = st_ref[0:1, :]
    shift = st_ref[1:2, :]
    y = y_ref[...].astype(jnp.float32)
    o_ref[...] = jnp.maximum(y * scale + shift, 0.0)


def cnr_forward(x, weight, gamma, beta, kernel_size=4, stride=1, padding=1, eps=1e-5):
    """x: (N, C_in, H, W) f32; weight: (C_out, C_in, kh, kw); gamma/beta: (C_out,)."""
    N, C_in, H, W = x.shape
    C_out, _, kh, kw = weight.shape
    Ho = (H + 2 * padding - kh) // stride + 1
    Wo = (W + 2 * padding - kw) // stride + 1
    M = N * Ho * Wo
    K = C_in * kh * kw

    vmem_limit, budget = _vmem_budget()

    C_pad = _round_up(C_out, 128)
    K_pad = _round_up(K, 128)
    tile_m, tile_k = _choose_phase1_tiles(M, K_pad, C_pad, budget)
    M_pad = _round_up(M, tile_m)
    num_m = M_pad // tile_m
    num_k = K_pad // tile_k

    # --- im2col in bf16 (cast BEFORE patch extraction).  Feature order of the patches is
    # (C_in major, kh, kw minor), matching weight.reshape(C_out, C_in*kh*kw).
    x_nhwc = jnp.transpose(x, (0, 2, 3, 1)).astype(jnp.bfloat16)
    patches = jax.lax.conv_general_dilated_patches(
        x_nhwc, (kh, kw), (stride, stride),
        [(padding, padding), (padding, padding)],
        dimension_numbers=('NHWC', 'HWIO', 'NHWC'))          # (N, Ho, Wo, K) bf16
    patches = patches.reshape(M, K)
    patches_p = jnp.pad(patches, ((0, M_pad - M), (0, K_pad - K)))

    w_mat = weight.reshape(C_out, K).T.astype(jnp.bfloat16)   # (K, C_out)
    w_p = jnp.pad(w_mat, ((0, K_pad - K), (0, C_pad - C_out)))

    # --- phase 1: GEMM + per-M-tile partial statistics -----------------------------
    y_bf16, partials = pl.pallas_call(
        _gemm_stats_kernel,
        out_shape=(jax.ShapeDtypeStruct((M_pad, C_pad), jnp.bfloat16),
                   jax.ShapeDtypeStruct((num_m * 8, C_pad), jnp.float32)),
        grid_spec=pltpu.PrefetchScalarGridSpec(
            num_scalar_prefetch=0,
            grid=(num_m, num_k),
            in_specs=[
                pl.BlockSpec((tile_m, tile_k), lambda m, k: (m, k)),
                # With num_k == 1 this index map is constant -> weights DMA'd once.
                pl.BlockSpec((tile_k, C_pad), lambda m, k: (k, 0)),
            ],
            out_specs=[
                pl.BlockSpec((tile_m, C_pad), lambda m, k: (m, 0)),
                pl.BlockSpec((8, C_pad), lambda m, k: (m, 0)),
            ],
            scratch_shapes=[pltpu.VMEM((tile_m, C_pad), jnp.float32)],
        ),
        compiler_params=pltpu.CompilerParams(
            dimension_semantics=("parallel", "arbitrary"),
            vmem_limit_bytes=vmem_limit,
        ),
    )(patches_p, w_p)

    # --- tiny fold: combine per-tile partials into per-channel (scale, shift) ------
    p3 = partials.reshape(num_m, 8, C_pad)
    tot_sum = jnp.sum(p3[:, 0, :], axis=0)                       # (C_pad,)
    tot_sq = jnp.sum(p3[:, 1, :], axis=0)
    mean = tot_sum / jnp.float32(M)
    var = jnp.maximum(tot_sq / jnp.float32(M) - mean * mean, 0.0)  # biased (train-mode BN)
    rstd = jax.lax.rsqrt(var + jnp.float32(eps))
    gamma_p = jnp.pad(gamma.astype(jnp.float32), (0, C_pad - C_out))
    beta_p = jnp.pad(beta.astype(jnp.float32), (0, C_pad - C_out))
    scale = gamma_p * rstd
    shift = beta_p - mean * scale
    stats = jnp.zeros((8, C_pad), jnp.float32).at[0, :].set(scale).at[1, :].set(shift)

    # --- phase 2: normalize + ReLU; purely memory-bound -> use much larger blocks ---
    rows_budget = max(budget // (12 * C_pad), tile_m)   # bf16 in + f32 out, double buffered
    tile_m2 = tile_m
    for j in range(num_m, 0, -1):
        cand = j * tile_m
        if num_m % j == 0 and cand <= rows_budget and cand <= 8192:
            tile_m2 = cand
            break
    num_m2 = M_pad // tile_m2

    out_flat = pl.pallas_call(
        _norm_relu_kernel,
        out_shape=jax.ShapeDtypeStruct((M_pad, C_pad), jnp.float32),
        grid_spec=pltpu.PrefetchScalarGridSpec(
            num_scalar_prefetch=0,
            grid=(num_m2,),
            in_specs=[
                pl.BlockSpec((tile_m2, C_pad), lambda m: (m, 0)),
                pl.BlockSpec((8, C_pad), lambda m: (0, 0)),
            ],
            out_specs=pl.BlockSpec((tile_m2, C_pad), lambda m: (m, 0)),
        ),
        compiler_params=pltpu.CompilerParams(
            dimension_semantics=("parallel",),
            vmem_limit_bytes=vmem_limit,
        ),
    )(y_bf16, stats)

    # strip padding, back to NCHW
    out = out_flat[:M, :C_out].reshape(N, Ho, Wo, C_out).transpose(0, 3, 1, 2)
    return out


def _reference(x, weight, gamma, beta, stride=1, padding=1, eps=1e-5):
    y = jax.lax.conv_general_dilated(
        x, weight, (stride, stride),
        [(padding, padding), (padding, padding)],
        dimension_numbers=('NCHW', 'OIHW', 'NCHW'))
    mean = y.mean(axis=(0, 2, 3), keepdims=True)
    var = ((y - mean) ** 2).mean(axis=(0, 2, 3), keepdims=True)
    yh = (y - mean) * jax.lax.rsqrt(var + eps)
    yh = yh * gamma.reshape(1, -1, 1, 1) + beta.reshape(1, -1, 1, 1)
    return jnp.maximum(yh, 0.0)


if __name__ == "__main__":
    key = jax.random.PRNGKey(0)
    k_x, k_w, k_g, k_b = jax.random.split(key, 4)

    # Small shapes consistent with the module defaults (norm='bnorm' -> conv bias=False).
    N, C_in, H, W = 2, 4, 16, 16
    C_out, kh, kw = 8, 4, 4

    x = jax.random.normal(k_x, (N, C_in, H, W), dtype=jnp.float32)

    fan_in = C_in * kh * kw
    bound = 1.0 / (fan_in ** 0.5)
    weight = jax.random.uniform(k_w, (C_out, C_in, kh, kw),
                                dtype=jnp.float32, minval=-bound, maxval=bound)
    gamma = 1.0 + 0.1 * jax.random.normal(k_g, (C_out,), dtype=jnp.float32)
    beta = 0.1 * jax.random.normal(k_b, (C_out,), dtype=jnp.float32)

    out = cnr_forward(x, weight, gamma, beta, kernel_size=4, stride=1, padding=1)
    out = jax.block_until_ready(out)
    assert out.shape == (N, C_out, H - 1, W - 1), out.shape

    ref = jax.block_until_ready(_reference(x, weight, gamma, beta))
    # bf16 MXU inputs + bf16 conv intermediate -> ~1e-2 abs deviation from the f32 ref.
    err = float(jnp.max(jnp.abs(out - ref)))
    assert err < 1e-1, f"max abs err {err}"

    print("KERNEL_OK")
</pallas_src>

<mosaic_0001>
module attributes {stable_mosaic.version = 11 : i64} {
  func.func @_gemm_stats_kernel(%arg0: i32, %arg1: i32, %arg2: memref<456x128xbf16, #tpu.memory_space<vmem>>, %arg3: memref<128x128xbf16, #tpu.memory_space<vmem>>, %arg4: memref<456x128xbf16, #tpu.memory_space<vmem>>, %arg5: memref<8x128xf32, #tpu.memory_space<vmem>>, %arg6: memref<456x128xf32, #tpu.memory_space<vmem>>) attributes {dimension_semantics = [#tpu.dimension_semantics<parallel>, #tpu.dimension_semantics<arbitrary>], iteration_bounds = array<i64: 1, 1>, scalar_prefetch = 0 : i64, scratch_operands = 1 : i64, tpu.core_type = #tpu.core_type<tc>, window_params = [{transform_indices = @transform_0, window_bounds = array<i64: 456, 128>}, {transform_indices = @transform_1, window_bounds = array<i64: 128, 128>}, {transform_indices = @transform_2, window_bounds = array<i64: 456, 128>}, {transform_indices = @transform_3, window_bounds = array<i64: 8, 128>}]} {
    %c0_i32 = arith.constant 0 : i32
    %0 = arith.cmpi eq, %arg1, %c0_i32 : i32
    %1 = arith.extui %0 : i1 to i32
    %c0_i32_0 = arith.constant 0 : i32
    %2 = arith.cmpi ne, %1, %c0_i32_0 : i32
    scf.if %2 {
      %cst_10 = arith.constant 0.000000e+00 : f32
      %12 = vector.broadcast %cst_10 : f32 to vector<456x128xf32>
      %c0_11 = arith.constant 0 : index
      %c0_12 = arith.constant 0 : index
      %13 = vector.load %arg6[%c0_11, %c0_12] : memref<456x128xf32, #tpu.memory_space<vmem>>, vector<456x128xf32>
      tpu.vector_store %arg6[%c0_11, %c0_12], %12 {strides = array<i32>} : memref<456x128xf32, #tpu.memory_space<vmem>>, vector<456x128xf32>,
    } else {
    }
    %c0 = arith.constant 0 : index
    %c0_1 = arith.constant 0 : index
    %3 = vector.load %arg6[%c0, %c0_1] : memref<456x128xf32, #tpu.memory_space<vmem>>, vector<456x128xf32>
    %c0_2 = arith.constant 0 : index
    %c0_3 = arith.constant 0 : index
    %4 = vector.load %arg2[%c0_2, %c0_3] : memref<456x128xbf16, #tpu.memory_space<vmem>>, vector<456x128xbf16>
    %c0_4 = arith.constant 0 : index
    %c0_5 = arith.constant 0 : index
    %5 = vector.load %arg3[%c0_4, %c0_5] : memref<128x128xbf16, #tpu.memory_space<vmem>>, vector<128x128xbf16>
    %cst = arith.constant dense<0.000000e+00> : vector<456x128xf32>
    %6 = tpu.matmul %4, %5, %cst {dimension_numbers = #tpu.dot_dimension_numbers<[1], [0], [0], [1], [0, 0, 1, 1], [], []>} : vector<456x128xbf16>, vector<128x128xbf16>, vector<456x128xf32> -> vector<456x128xf32>
    %7 = arith.addf %3, %6 : vector<456x128xf32>
    %c0_6 = arith.constant 0 : index
    %c0_7 = arith.constant 0 : index
    %8 = vector.load %arg6[%c0_6, %c0_7] : memref<456x128xf32, #tpu.memory_space<vmem>>, vector<456x128xf32>
    tpu.vector_store %arg6[%c0_6, %c0_7], %7 {strides = array<i32>} : memref<456x128xf32, #tpu.memory_space<vmem>>, vector<456x128xf32>,
    %c0_i32_8 = arith.constant 0 : i32
    %9 = arith.cmpi eq, %arg1, %c0_i32_8 : i32
    %10 = arith.extui %9 : i1 to i32
    %c0_i32_9 = arith.constant 0 : i32
    %11 = arith.cmpi ne, %10, %c0_i32_9 : i32
    scf.if %11 {
      %c0_10 = arith.constant 0 : index
      %c0_11 = arith.constant 0 : index
      %12 = vector.load %arg6[%c0_10, %c0_11] : memref<456x128xf32, #tpu.memory_space<vmem>>, vector<456x128xf32>
      %13 = arith.truncf %12 : vector<456x128xf32> to vector<456x128xbf16>
      %c0_12 = arith.constant 0 : index
      %c0_13 = arith.constant 0 : index
      %14 = vector.load %arg4[%c0_12, %c0_13] : memref<456x128xbf16, #tpu.memory_space<vmem>>, vector<456x128xbf16>
      tpu.vector_store %arg4[%c0_12, %c0_13], %13 {strides = array<i32>} : memref<456x128xbf16, #tpu.memory_space<vmem>>, vector<456x128xbf16>,
      %cst_14 = arith.constant 0.000000e+00 : f32
      %15 = vector.broadcast %cst_14 : f32 to vector<8x128xf32>
      %c0_15 = arith.constant 0 : index
      %c0_16 = arith.constant 0 : index
      %16 = vector.load %arg5[%c0_15, %c0_16] : memref<8x128xf32, #tpu.memory_space<vmem>>, vector<8x128xf32>
      tpu.vector_store %arg5[%c0_15, %c0_16], %15 {strides = array<i32>} : memref<8x128xf32, #tpu.memory_space<vmem>>, vector<8x128xf32>,
      %cst_17 = arith.constant dense<0.000000e+00> : vector<128xf32>
      %17 = vector.multi_reduction <add>, %12, %cst_17 [0] : vector<456x128xf32> to vector<128xf32>
      %18 = vector.shape_cast %17 : vector<128xf32> to vector<1x128xf32>
      %c0_18 = arith.constant 0 : index
      %c0_19 = arith.constant 0 : index
      %19 = vector.load %arg5[%c0_18, %c0_19] : memref<8x128xf32, #tpu.memory_space<vmem>>, vector<1x128xf32>
      tpu.vector_store %arg5[%c0_18, %c0_19], %18 {strides = array<i32>} : memref<8x128xf32, #tpu.memory_space<vmem>>, vector<1x128xf32>,
      %20 = arith.mulf %12, %12 : vector<456x128xf32>
      %cst_20 = arith.constant dense<0.000000e+00> : vector<128xf32>
      %21 = vector.multi_reduction <add>, %20, %cst_20 [0] : vector<456x128xf32> to vector<128xf32>
      %22 = vector.shape_cast %21 : vector<128xf32> to vector<1x128xf32>
      %c1 = arith.constant 1 : index
      %c0_21 = arith.constant 0 : index
      %23 = vector.load %arg5[%c1, %c0_21] : memref<8x128xf32, #tpu.memory_space<vmem>>, vector<1x128xf32>
      tpu.vector_store %arg5[%c1, %c0_21], %22 {strides = array<i32>} : memref<8x128xf32, #tpu.memory_space<vmem>>, vector<1x128xf32>,
    } else {
    }
    return
  }
  func.func @transform_0(%arg0: i32, %arg1: i32) -> (i32, i32) {
    %c0_i32 = arith.constant 0 : i32
    return %arg0, %arg1 : i32, i32
  }
  func.func @transform_1(%arg0: i32, %arg1: i32) -> (i32, i32) {
    %c0_i32 = arith.constant 0 : i32
    %c0_i32_0 = arith.constant 0 : i32
    return %arg1, %c0_i32 : i32, i32
  }
  func.func @transform_2(%arg0: i32, %arg1: i32) -> (i32, i32) {
    %c0_i32 = arith.constant 0 : i32
    %c0_i32_0 = arith.constant 0 : i32
    return %arg0, %c0_i32 : i32, i32
  }
  func.func @transform_3(%arg0: i32, %arg1: i32) -> (i32, i32) {
    %c0_i32 = arith.constant 0 : i32
    %c0_i32_0 = arith.constant 0 : i32
    return %arg0, %c0_i32 : i32, i32
  }
}

</mosaic_0001>

<bundles_post_ra>
// kernel: tpu_custom_call.1
= control target key start
LH: loop header
LB: loop body
LE: loop exit
PB: predicated region body
PF: predicated region fallthrough
CT: control target
= control target key end

     0   :  { %9 = vsyncpa [#allocation4], 0  ;;  %s2362_s0 = inlined_call_operand.hbm [shape: bf16[456,128], index: 0, kind: input, shape index: {}]   ;;  %s2363_s1 = inlined_call_operand.hbm [shape: bf16[128,128], index: 1, kind: input, shape index: {}]   ;;  %s2364_s2 = inlined_call_operand.hbm [shape: bf16[456,128], index: 2, kind: output, shape index: {0}]   ;;  %s2365_s3 = inlined_call_operand.hbm [shape: f32[8,128], index: 3, kind: output, shape index: {1}]  }
   0x1   :  { %10 = vsyncpa [#allocation7], 0 }
   0x2   :  { %11 = vsyncpa [#allocation5], 0 }
   0x3   :  { %12 = vsyncpa [#allocation10], 0  ;;  %s2039_s12 = smov [#allocation3]   ;;  %s1943_s16 = scalar_lea.hbm %s2362_s0, 3648 }
   0x4   :  { %s18_s13 = sshll.u32 %s2039_s12, 4  ;;  %p1944_p0 = scmp.ne.s32.totalorder %s2362_s0, %s1943_s16  ;;  %s19_s13 = int_to_ptr.vmem [resolvable:$true] %s18_s13 }
   0x5   :  { %p1947_p1 = scmp.lt.u32.totalorder %s1943_s16, %s2362_s0 }
   0x7   :  { %p1949_p2 = pnand %p1947_p1, %p1944_p0 }
   0x9   :  { %1952 = shalt.err (!%p1949_p2)
}
   0xa   :  { %s1953_s21 = scalar_lea.vmem %s19_s13, 3648  ;;  %p1958_p4 = scmp.lt.s32.totalorder %s19_s13, %s19_s13 }
   0xb   :  { %p1954_p3 = scmp.ne.s32.totalorder %s19_s13, %s1953_s21  ;;  %p1959_p5 = scmp.lt.s32.totalorder %s1953_s21, %s1953_s21 }
   0xd   :  { %p1960_p6 = por %p1959_p5, %p1958_p4 }
   0xf   :  { %p1961_p7 = pnand %p1960_p6, %p1954_p3 }
  0x11   :  { %1964 = shalt.err (!%p1961_p7)
}
  0x12   :  { %s2040_s22 = smov 64   ;;  %s2041_s23 = smov 4  }
  0x13   :  { %24 = dma.hbm_to_vmem [thread:$0]  %s2362_s0, 3648, %s19_s13, [#allocation4], %s2040_s22, %s2040_s22, %s2041_s23  }
  0x14   :  { %s2042_s26 = smov [#allocation6]   ;;  %s1965_s30 = scalar_lea.hbm %s2363_s1, 1024 }
  0x15   :  { %s30_s27 = sshll.u32 %s2042_s26, 4  ;;  %p1966_p8 = scmp.ne.s32.totalorder %s2363_s1, %s1965_s30  ;;  %s31_s27 = int_to_ptr.vmem [resolvable:$true] %s30_s27 }
  0x16   :  { %p1969_p9 = scmp.lt.u32.totalorder %s1965_s30, %s2363_s1 }
  0x18   :  { %p1971_p10 = pnand %p1969_p9, %p1966_p8 }
  0x1a   :  { %1974 = shalt.err (!%p1971_p10)
}
  0x1b   :  { %s1975_s8 = scalar_lea.vmem %s31_s27, 1024  ;;  %p1980_p12 = scmp.lt.s32.totalorder %s31_s27, %s31_s27 }
  0x1c   :  { %p1976_p11 = scmp.ne.s32.totalorder %s31_s27, %s1975_s8  ;;  %p1981_p13 = scmp.lt.s32.totalorder %s1975_s8, %s1975_s8 }
  0x1e   :  { %p1982_p0 = por %p1981_p13, %p1980_p12 }
  0x20   :  { %p1983_p1 = pnand %p1982_p0, %p1976_p11 }
  0x22   :  { %1986 = shalt.err (!%p1983_p1)
}
  0x23   :  { %36 = dma.hbm_to_vmem [thread:$0]  %s2363_s1, 1024, %s31_s27, [#allocation7], %s2040_s22, %s2040_s22, %s2041_s23  }
  0x24   :  { %2031 = dma.done.wait [#allocation4], 3648  }
  0x25   :  { %2032 = vsyncadd [#allocation4], 4294963648 }
  0x26   :  { %2033 = dma.done.wait [#allocation7], 1024  }
  0x27   :  { %2034 = vsyncadd [#allocation7], 4294966272  ;;  %v2043_v0 = vmov 0.0   ;;  %vm2044_vm0 = vmmov 0   ;;  %v1906_v1 = vld [vmem:[#allocation6] sm:$0xff]   ;;  %v1907_v2 = vld [vmem:[#allocation6 + $0x8] sm:$0xff]  }
  0x28   :  { %1750 = vmatprep.subr.bf16.mxu0 %v2043_v0  ;;  %1179 = vst [vmem:[#allocation9] sm:$0xff] %v2043_v0  ;;  %1766 = vmatprep.mubr.msk.bf16.mxu0 %vm2044_vm0, %v2043_v0  ;;  %v1908_v3 = vld [vmem:[#allocation6 + $0x10] sm:$0xff]   ;;  %v1909_v4 = vld [vmem:[#allocation6 + $0x18] sm:$0xff]   ;;  %v1910_v5 = vld [vmem:[#allocation6 + $0x20] sm:$0xff]   ;;  %s2045_s1 = smov [#allocation8]  }
  0x29   :  { %1882 = vmatprep.subr.bf16.mxu1 %v2043_v0  ;;  %1826 = vmatprep.mubr.msk.bf16.mxu1 %vm2044_vm0, %v2043_v0  ;;  %v1911_v6 = vld [vmem:[#allocation6 + $0x28] sm:$0xff]   ;;  %v1912_v7 = vld [vmem:[#allocation6 + $0x30] sm:$0xff]   ;;  %v1913_v8 = vld [vmem:[#allocation6 + $0x38] sm:$0xff]   ;;  %s1368_s10 = sshll.u32 %s2045_s1, 4  ;;  %s1369_s10 = int_to_ptr.vmem [resolvable:$true] %s1368_s10 }
  0x2a   :  { %1751 = vmatpush3.bf16.msra.mxu0 %v1906_v1  ;;  %1890 = vmatpush3.bf16.msra.mxu1 %v1906_v1  ;;  %v1914_v9 = vld [vmem:[#allocation3] sm:$0xff]   ;;  %v1922_v10 = vld [vmem:[#allocation3 + $0x78] sm:$0xff]   ;;  %v1915_v11 = vld [vmem:[#allocation3 + $0x8] sm:$0xff]   ;;  %s1987_s11 = scalar_lea.vmem %s1369_s10, 3648  ;;  %p1992_p3 = scmp.lt.s32.totalorder %s1369_s10, %s1369_s10 }
  0x2b   :  { %1752 = vmatprep.subr.bf16.mxu0 %v2043_v0  ;;  %1883 = vmatprep.subr.bf16.mxu1 %v2043_v0  ;;  %v1924_v12 = vld [vmem:[#allocation3 + $0x80] sm:$0xff]   ;;  %v1916_v13 = vld [vmem:[#allocation3 + $0x10] sm:$0xff]   ;;  %v1926_v14 = vld [vmem:[#allocation3 + $0x88] sm:$0xff]   ;;  %p1988_p2 = scmp.ne.s32.totalorder %s1369_s10, %s1987_s11  ;;  %p1993_p4 = scmp.lt.s32.totalorder %s1987_s11, %s1987_s11 }
  0x2c   :  { %v1917_v15 = vld [vmem:[#allocation3 + $0x18] sm:$0xff]   ;;  %v1928_v16 = vld [vmem:[#allocation3 + $0x90] sm:$0xff]   ;;  %v1918_v17 = vld [vmem:[#allocation3 + $0x20] sm:$0xff]  }
  0x2d   :  { %v1930_v18 = vld [vmem:[#allocation3 + $0x98] sm:$0xff]   ;;  %v1919_v19 = vld [vmem:[#allocation3 + $0x28] sm:$0xff]   ;;  %v1932_v20 = vld [vmem:[#allocation3 + $0xa0] sm:$0xff]   ;;  %p1994_p5 = por %p1993_p4, %p1992_p3 }
  0x2e   :  { %1753 = vmatpush3.bf16.msra.mxu0 %v1907_v2  ;;  %1891 = vmatpush3.bf16.msra.mxu1 %v1907_v2  ;;  %v1920_v21 = vld [vmem:[#allocation3 + $0x30] sm:$0xff]   ;;  %v1934_v22 = vld [vmem:[#allocation3 + $0xa8] sm:$0xff]   ;;  %v1921_v23 = vld [vmem:[#allocation3 + $0x38] sm:$0xff]  }
  0x2f   :  { %1754 = vmatprep.subr.bf16.mxu0 %v2043_v0  ;;  %1884 = vmatprep.subr.bf16.mxu1 %v2043_v0  ;;  %v1936_v24 = vld [vmem:[#allocation3 + $0xb0] sm:$0xff]   ;;  %v1923_v25 = vld [vmem:[#allocation3 + $0x40] sm:$0xff]   ;;  %v1937_v26 = vld [vmem:[#allocation3 + $0xb8] sm:$0xff]   ;;  %p1995_p6 = pnand %p1994_p5, %p1988_p2 }
  0x30   :  { %v1925_v27 = vld [vmem:[#allocation3 + $0x48] sm:$0xff]   ;;  %v1938_v28 = vld [vmem:[#allocation3 + $0xc0] sm:$0xff]   ;;  %v1927_v29 = vld [vmem:[#allocation3 + $0x50] sm:$0xff]  }
  0x31   :  { %v1939_v30 = vld [vmem:[#allocation3 + $0xc8] sm:$0xff]   ;;  %v1929_v31 = vld [vmem:[#allocation3 + $0x58] sm:$0xff]   ;;  %v1940_v32 = vld [vmem:[#allocation3 + $0xd0] sm:$0xff]  }
  0x32   :  { %1755 = vmatpush3.bf16.msra.mxu0 %v1908_v3  ;;  %1892 = vmatpush3.bf16.msra.mxu1 %v1908_v3  ;;  %v1931_v33 = vld [vmem:[#allocation3 + $0x60] sm:$0xff]   ;;  %v1941_v34 = vld [vmem:[#allocation3 + $0xd8] sm:$0xff]   ;;  %v1933_v35 = vld [vmem:[#allocation3 + $0x68] sm:$0xff]  }
  0x33   :  { %1756 = vmatprep.subr.bf16.mxu0 %v2043_v0  ;;  %1885 = vmatprep.subr.bf16.mxu1 %v2043_v0  ;;  %v1942_v36 = vld [vmem:[#allocation3 + $0xe0] ss:$0 sps:$4 sm:$0xff]   ;;  %v1935_v37 = vld [vmem:[#allocation3 + $0x70] sm:$0xff]  }
  0x36   :  { %1757 = vmatpush3.bf16.msra.mxu0 %v1909_v4  ;;  %1893 = vmatpush3.bf16.msra.mxu1 %v1909_v4 }
  0x37   :  { %1758 = vmatprep.subr.bf16.mxu0 %v2043_v0  ;;  %1886 = vmatprep.subr.bf16.mxu1 %v2043_v0 }
  0x3a   :  { %1759 = vmatpush3.bf16.msra.mxu0 %v1910_v5  ;;  %1894 = vmatpush3.bf16.msra.mxu1 %v1910_v5 }
  0x3b   :  { %1760 = vmatprep.subr.bf16.mxu0 %v2043_v0  ;;  %1887 = vmatprep.subr.bf16.mxu1 %v2043_v0 }
  0x3e   :  { %1761 = vmatpush3.bf16.msra.mxu0 %v1911_v6  ;;  %1895 = vmatpush3.bf16.msra.mxu1 %v1911_v6 }
  0x3f   :  { %1762 = vmatprep.subr.bf16.mxu0 %v2043_v0  ;;  %1888 = vmatprep.subr.bf16.mxu1 %v2043_v0 }
  0x42   :  { %1763 = vmatpush3.bf16.msra.mxu0 %v1912_v7  ;;  %1896 = vmatpush3.bf16.msra.mxu1 %v1912_v7 }
  0x43   :  { %1764 = vmatprep.subr.bf16.mxu0 %v2043_v0  ;;  %1889 = vmatprep.subr.bf16.mxu1 %v2043_v0 }
  0x46   :  { %1765 = vmatpush3.bf16.msra.mxu0 %v1913_v8  ;;  %1897 = vmatpush3.bf16.msra.mxu1 %v1913_v8 }
  0x49   :  { %1767 = vmatmul.mubr.bf16.vlgmr.msra.gmra.mrb[0].mxu0 %v1914_v9  ;;  %1827 = vmatmul.mubr.bf16.vlgmr.msra.gmra.mrb[0].mxu1 %v1922_v10 }
  0x4a   :  { %1770 = vmatprep.mubr.msk.bf16.mxu0 %vm2044_vm0, %v2043_v0  ;;  %1830 = vmatprep.mubr.msk.bf16.mxu1 %vm2044_vm0, %v2043_v0 }
  0x51   :  { %1771 = vmatmul.mubr.bf16.gmra.mrb[4].mxu0 %v1915_v11  ;;  %1831 = vmatmul.mubr.bf16.gmra.mrb[4].mxu1 %v1924_v12 }
  0x52   :  { %1774 = vmatprep.mubr.msk.bf16.mxu0 %vm2044_vm0, %v2043_v0  ;;  %1834 = vmatprep.mubr.msk.bf16.mxu1 %vm2044_vm0, %v2043_v0 }
  0x59   :  { %1775 = vmatmul.mubr.bf16.gmra.mrb[8].mxu0 %v1916_v13  ;;  %1835 = vmatmul.mubr.bf16.gmra.mrb[8].mxu1 %v1926_v14 }
  0x5a   :  { %1778 = vmatprep.mubr.msk.bf16.mxu0 %vm2044_vm0, %v2043_v0  ;;  %1838 = vmatprep.mubr.msk.bf16.mxu1 %vm2044_vm0, %v2043_v0 }
  0x61   :  { %1779 = vmatmul.mubr.bf16.gmra.mrb[12].mxu0 %v1917_v15  ;;  %1839 = vmatmul.mubr.bf16.gmra.mrb[12].mxu1 %v1928_v16 }
  0x62   :  { %1782 = vmatprep.mubr.msk.bf16.mxu0 %vm2044_vm0, %v2043_v0  ;;  %1842 = vmatprep.mubr.msk.bf16.mxu1 %vm2044_vm0, %v2043_v0 }
  0x69   :  { %1783 = vmatmul.mubr.bf16.gmra.mrb[16].mxu0 %v1918_v17  ;;  %1843 = vmatmul.mubr.bf16.gmra.mrb[16].mxu1 %v1930_v18 }
  0x6a   :  { %1786 = vmatprep.mubr.msk.bf16.mxu0 %vm2044_vm0, %v2043_v0  ;;  %1846 = vmatprep.mubr.msk.bf16.mxu1 %vm2044_vm0, %v2043_v0 }
  0x71   :  { %1787 = vmatmul.mubr.bf16.gmra.mrb[20].mxu0 %v1919_v19  ;;  %1847 = vmatmul.mubr.bf16.gmra.mrb[20].mxu1 %v1932_v20 }
  0x72   :  { %1790 = vmatprep.mubr.msk.bf16.mxu0 %vm2044_vm0, %v2043_v0  ;;  %1850 = vmatprep.mubr.msk.bf16.mxu1 %vm2044_vm0, %v2043_v0 }
  0x79   :  { %1791 = vmatmul.mubr.bf16.gmra.mrb[24].mxu0 %v1920_v21  ;;  %1851 = vmatmul.mubr.bf16.gmra.mrb[24].mxu1 %v1934_v22 }
  0x7a   :  { %1794 = vmatprep.mubr.msk.bf16.mxu0 %vm2044_vm0, %v2043_v0  ;;  %1854 = vmatprep.mubr.msk.bf16.mxu1 %vm2044_vm0, %v2043_v0 }
  0x81   :  { %1795 = vmatmul.mubr.bf16.gmra.mrb[28].mxu0 %v1921_v23  ;;  %1855 = vmatmul.mubr.bf16.gmra.mrb[28].mxu1 %v1936_v24 }
  0x82   :  { %1798 = vmatprep.mubr.msk.bf16.mxu0 %vm2044_vm0, %v2043_v0  ;;  %1858 = vmatprep.mubr.msk.bf16.mxu1 %vm2044_vm0, %v2043_v0 }
  0x89   :  { %1799 = vmatmul.mubr.bf16.gmra.mrb[32].mxu0 %v1923_v25  ;;  %1859 = vmatmul.mubr.bf16.gmra.mrb[32].mxu1 %v1937_v26 }
  0x8a   :  { %1802 = vmatprep.mubr.msk.bf16.mxu0 %vm2044_vm0, %v2043_v0  ;;  %1862 = vmatprep.mubr.msk.bf16.mxu1 %vm2044_vm0, %v2043_v0 }
  0x91   :  { %1803 = vmatmul.mubr.bf16.gmra.mrb[36].mxu0 %v1925_v27  ;;  %1863 = vmatmul.mubr.bf16.gmra.mrb[36].mxu1 %v1938_v28 }
  0x92   :  { %1806 = vmatprep.mubr.msk.bf16.mxu0 %vm2044_vm0, %v2043_v0  ;;  %1866 = vmatprep.mubr.msk.bf16.mxu1 %vm2044_vm0, %v2043_v0 }
  0x99   :  { %1807 = vmatmul.mubr.bf16.gmra.mrb[40].mxu0 %v1927_v29  ;;  %1867 = vmatmul.mubr.bf16.gmra.mrb[40].mxu1 %v1939_v30 }
  0x9a   :  { %1810 = vmatprep.mubr.msk.bf16.mxu0 %vm2044_vm0, %v2043_v0  ;;  %1870 = vmatprep.mubr.msk.bf16.mxu1 %vm2044_vm0, %v2043_v0 }
  0xa1   :  { %1811 = vmatmul.mubr.bf16.gmra.mrb[44].mxu0 %v1929_v31  ;;  %1871 = vmatmul.mubr.bf16.gmra.mrb[44].mxu1 %v1940_v32 }
  0xa2   :  { %1814 = vmatprep.mubr.msk.bf16.mxu0 %vm2044_vm0, %v2043_v0  ;;  %1874 = vmatprep.mubr.msk.bf16.mxu1 %vm2044_vm0, %v2043_v0 }
  0xa9   :  { %1815 = vmatmul.mubr.bf16.gmra.mrb[48].mxu0 %v1931_v33  ;;  %1875 = vmatmul.mubr.bf16.gmra.mrb[48].mxu1 %v1941_v34 }
  0xaa   :  { %1818 = vmatprep.mubr.msk.bf16.mxu0 %vm2044_vm0, %v2043_v0  ;;  %1878 = vmatprep.mubr.msk.bf16.mxu1 %vm2044_vm0, %v2043_v0 }
  0xb1   :  { %1819 = vmatmul.mubr.bf16.gmra.mrb[52].mxu0 %v1933_v35  ;;  %1879 = vmatmul.mubr.bf16.gmra.mrb[52].mxu1 %v1942_v36 }
  0xb2   :  { %1822 = vmatprep.mubr.msk.bf16.mxu0 %vm2044_vm0, %v2043_v0 }
  0xb9   :  { %1823 = vmatmul.mubr.bf16.gmra.mrb[56].mxu0 %v1935_v37 }
 0x11c   :  { %v489_v38 = vpop.f32.mrb[0].mxu0  ;;  %v2172_v39 = vpop.f32.mrb[0].mxu1 }
 0x11d   :  { %v1768_v40 = vpop.f32.mrb[1].mxu0  ;;  %v1828_v41 = vpop.f32.mrb[1].mxu1  ;;  %v1243_v42 = vmul.f32 %v489_v38, %v489_v38 }
 0x11e   :  { %v492_v43 = vpop.f32.mrb[2].mxu0  ;;  %v2174_v44 = vpop.f32.mrb[2].mxu1 }
 0x11f   :  { %v1549_v45 = vpack.c.bf16 %v492_v43, %v489_v38  ;;  %v1180_v46 = vadd.f32 %v492_v43, %v489_v38  ;;  %v1244_v47 = vmul.f32 %v492_v43, %v492_v43  ;;  %v1769_v48 = vpop.f32.mrb[3].mxu0  ;;  %v1624_v49 = vpack.c.bf16 %v2174_v44, %v2172_v39  ;;  %v1829_v50 = vpop.f32.mrb[3].mxu1 }
 0x121   :  { %1550 = vst [vmem:[#allocation8] sm:$0xff] %v1549_v45   ;;  %v1300_v51 = vadd.f32 %v1244_v47, %v1243_v42  ;;  %1700 = vst [vmem:[#allocation8 + $0x78] sm:$0xff] %v1624_v49  }
 0x124   :  { %v497_v52 = vpop.f32.mrb[4].mxu0  ;;  %v2178_v53 = vpop.f32.mrb[4].mxu1 }
 0x125   :  { %v1181_v54 = vadd.f32 %v1180_v46, %v497_v52  ;;  %v1245_v55 = vmul.f32 %v497_v52, %v497_v52  ;;  %v1772_v56 = vpop.f32.mrb[5].mxu0  ;;  %v1832_v57 = vpop.f32.mrb[5].mxu1 }
 0x126   :  { %v500_v58 = vpop.f32.mrb[6].mxu0  ;;  %v2180_v59 = vpop.f32.mrb[6].mxu1 }
 0x127   :  { %v1301_v60 = vadd.f32 %v1300_v51, %v1245_v55  ;;  %v1554_v61 = vpack.c.bf16 %v500_v58, %v497_v52  ;;  %v1182_v62 = vadd.f32 %v1181_v54, %v500_v58  ;;  %v1246_v63 = vmul.f32 %v500_v58, %v500_v58  ;;  %v1773_v0 = vpop.f32.mrb[7].mxu0  ;;  %v1833_v1 = vpop.f32.mrb[7].mxu1 }
 0x128   :  { %v1629_v2 = vpack.c.bf16 %v2180_v59, %v2178_v53 }
 0x129   :  { %1686 = vst [vmem:[#allocation8 + $0x8] sm:$0xff] %v1554_v61   ;;  %v1302_v3 = vadd.f32 %v1301_v60, %v1246_v63 }
 0x12a   :  { %1701 = vst [vmem:[#allocation8 + $0x80] sm:$0xff] %v1629_v2  }
 0x12c   :  { %v505_v4 = vpop.f32.mrb[8].mxu0  ;;  %v2184_v5 = vpop.f32.mrb[8].mxu1 }
 0x12d   :  { %v1183_v6 = vadd.f32 %v1182_v62, %v505_v4  ;;  %v1247_v7 = vmul.f32 %v505_v4, %v505_v4  ;;  %v1776_v8 = vpop.f32.mrb[9].mxu0  ;;  %v1836_v9 = vpop.f32.mrb[9].mxu1 }
 0x12e   :  { %v508_v10 = vpop.f32.mrb[10].mxu0  ;;  %v2186_v11 = vpop.f32.mrb[10].mxu1 }
 0x12f   :  { %v1303_v12 = vadd.f32 %v1302_v3, %v1247_v7  ;;  %v1559_v13 = vpack.c.bf16 %v508_v10, %v505_v4  ;;  %v1184_v14 = vadd.f32 %v1183_v6, %v508_v10  ;;  %v1248_v15 = vmul.f32 %v508_v10, %v508_v10  ;;  %v1777_v16 = vpop.f32.mrb[11].mxu0  ;;  %v1837_v17 = vpop.f32.mrb[11].mxu1 }
 0x130   :  { %v1634_v18 = vpack.c.bf16 %v2186_v11, %v2184_v5 }
 0x131   :  { %1687 = vst [vmem:[#allocation8 + $0x10] sm:$0xff] %v1559_v13   ;;  %v1304_v19 = vadd.f32 %v1303_v12, %v1248_v15 }
 0x132   :  { %1702 = vst [vmem:[#allocation8 + $0x88] sm:$0xff] %v1634_v18  }
 0x134   :  { %v513_v20 = vpop.f32.mrb[12].mxu0  ;;  %v2190_v21 = vpop.f32.mrb[12].mxu1 }
 0x135   :  { %v1185_v22 = vadd.f32 %v1184_v14, %v513_v20  ;;  %v1249_v23 = vmul.f32 %v513_v20, %v513_v20  ;;  %v1780_v24 = vpop.f32.mrb[13].mxu0  ;;  %v1840_v25 = vpop.f32.mrb[13].mxu1 }
 0x136   :  { %v516_v26 = vpop.f32.mrb[14].mxu0  ;;  %v2192_v27 = vpop.f32.mrb[14].mxu1 }
 0x137   :  { %v1305_v28 = vadd.f32 %v1304_v19, %v1249_v23  ;;  %v1564_v29 = vpack.c.bf16 %v516_v26, %v513_v20  ;;  %v1186_v30 = vadd.f32 %v1185_v22, %v516_v26  ;;  %v1250_v31 = vmul.f32 %v516_v26, %v516_v26  ;;  %v1781_v32 = vpop.f32.mrb[15].mxu0  ;;  %v1841_v33 = vpop.f32.mrb[15].mxu1 }
 0x138   :  { %v1639_v34 = vpack.c.bf16 %v2192_v27, %v2190_v21 }
 0x139   :  { %1688 = vst [vmem:[#allocation8 + $0x18] sm:$0xff] %v1564_v29   ;;  %v1306_v35 = vadd.f32 %v1305_v28, %v1250_v31 }
 0x13a   :  { %1703 = vst [vmem:[#allocation8 + $0x90] sm:$0xff] %v1639_v34  }
 0x13c   :  { %v521_v36 = vpop.f32.mrb[16].mxu0  ;;  %v2196_v37 = vpop.f32.mrb[16].mxu1 }
 0x13d   :  { %v1187_v38 = vadd.f32 %v1186_v30, %v521_v36  ;;  %v1251_v40 = vmul.f32 %v521_v36, %v521_v36  ;;  %v1784_v41 = vpop.f32.mrb[17].mxu0  ;;  %v1844_v42 = vpop.f32.mrb[17].mxu1 }
 0x13e   :  { %v524_v43 = vpop.f32.mrb[18].mxu0  ;;  %v2198_v45 = vpop.f32.mrb[18].mxu1 }
 0x13f   :  { %v1307_v46 = vadd.f32 %v1306_v35, %v1251_v40  ;;  %v1569_v47 = vpack.c.bf16 %v524_v43, %v521_v36  ;;  %v1188_v48 = vadd.f32 %v1187_v38, %v524_v43  ;;  %v1252_v49 = vmul.f32 %v524_v43, %v524_v43  ;;  %v1785_v50 = vpop.f32.mrb[19].mxu0  ;;  %v1845_v51 = vpop.f32.mrb[19].mxu1 }
 0x140   :  { %v1644_v52 = vpack.c.bf16 %v2198_v45, %v2196_v37 }
 0x141   :  { %1689 = vst [vmem:[#allocation8 + $0x20] sm:$0xff] %v1569_v47   ;;  %v1308_v54 = vadd.f32 %v1307_v46, %v1252_v49 }
 0x142   :  { %1704 = vst [vmem:[#allocation8 + $0x98] sm:$0xff] %v1644_v52  }
 0x144   :  { %v529_v55 = vpop.f32.mrb[20].mxu0  ;;  %v2202_v56 = vpop.f32.mrb[20].mxu1 }
 0x145   :  { %v1189_v57 = vadd.f32 %v1188_v48, %v529_v55  ;;  %v1253_v58 = vmul.f32 %v529_v55, %v529_v55  ;;  %v1788_v60 = vpop.f32.mrb[21].mxu0  ;;  %v1848_v61 = vpop.f32.mrb[21].mxu1 }
 0x146   :  { %v532_v62 = vpop.f32.mrb[22].mxu0  ;;  %v2204_v63 = vpop.f32.mrb[22].mxu1 }
 0x147   :  { %v1309_v0 = vadd.f32 %v1308_v54, %v1253_v58  ;;  %v1574_v1 = vpack.c.bf16 %v532_v62, %v529_v55  ;;  %v1190_v2 = vadd.f32 %v1189_v57, %v532_v62  ;;  %v1254_v3 = vmul.f32 %v532_v62, %v532_v62  ;;  %v1789_v4 = vpop.f32.mrb[23].mxu0  ;;  %v1849_v6 = vpop.f32.mrb[23].mxu1 }
 0x148   :  { %v1649_v7 = vpack.c.bf16 %v2204_v63, %v2202_v56 }
 0x149   :  { %1690 = vst [vmem:[#allocation8 + $0x28] sm:$0xff] %v1574_v1   ;;  %v1310_v8 = vadd.f32 %v1309_v0, %v1254_v3 }
 0x14a   :  { %1705 = vst [vmem:[#allocation8 + $0xa0] sm:$0xff] %v1649_v7  }
 0x14c   :  { %v537_v9 = vpop.f32.mrb[24].mxu0  ;;  %v2208_v10 = vpop.f32.mrb[24].mxu1 }
 0x14d   :  { %v1191_v12 = vadd.f32 %v1190_v2, %v537_v9  ;;  %v1255_v13 = vmul.f32 %v537_v9, %v537_v9  ;;  %v1792_v14 = vpop.f32.mrb[25].mxu0  ;;  %v1852_v15 = vpop.f32.mrb[25].mxu1 }
 0x14e   :  { %v540_v16 = vpop.f32.mrb[26].mxu0  ;;  %v2210_v17 = vpop.f32.mrb[26].mxu1 }
 0x14f   :  { %v1311_v18 = vadd.f32 %v1310_v8, %v1255_v13  ;;  %v1579_v19 = vpack.c.bf16 %v540_v16, %v537_v9  ;;  %v1192_v20 = vadd.f32 %v1191_v12, %v540_v16  ;;  %v1256_v22 = vmul.f32 %v540_v16, %v540_v16  ;;  %v1793_v23 = vpop.f32.mrb[27].mxu0  ;;  %v1853_v24 = vpop.f32.mrb[27].mxu1 }
 0x150   :  { %v1654_v25 = vpack.c.bf16 %v2210_v17, %v2208_v10 }
 0x151   :  { %1691 = vst [vmem:[#allocation8 + $0x30] sm:$0xff] %v1579_v19   ;;  %v1312_v26 = vadd.f32 %v1311_v18, %v1256_v22 }
 0x152   :  { %1706 = vst [vmem:[#allocation8 + $0xa8] sm:$0xff] %v1654_v25  }
 0x154   :  { %v545_v28 = vpop.f32.mrb[28].mxu0  ;;  %v2214_v29 = vpop.f32.mrb[28].mxu1 }
 0x155   :  { %v1193_v30 = vadd.f32 %v1192_v20, %v545_v28  ;;  %v1257_v31 = vmul.f32 %v545_v28, %v545_v28  ;;  %v1796_v32 = vpop.f32.mrb[29].mxu0  ;;  %v1856_v33 = vpop.f32.mrb[29].mxu1 }
 0x156   :  { %v548_v34 = vpop.f32.mrb[30].mxu0  ;;  %v2216_v35 = vpop.f32.mrb[30].mxu1 }
 0x157   :  { %v1313_v36 = vadd.f32 %v1312_v26, %v1257_v31  ;;  %v1584_v38 = vpack.c.bf16 %v548_v34, %v545_v28  ;;  %v1194_v40 = vadd.f32 %v1193_v30, %v548_v34  ;;  %v1258_v41 = vmul.f32 %v548_v34, %v548_v34  ;;  %v1797_v42 = vpop.f32.mrb[31].mxu0  ;;  %v1857_v43 = vpop.f32.mrb[31].mxu1 }
 0x158   :  { %v1659_v46 = vpack.c.bf16 %v2216_v35, %v2214_v29 }
 0x159   :  { %1692 = vst [vmem:[#allocation8 + $0x38] sm:$0xff] %v1584_v38   ;;  %v1314_v47 = vadd.f32 %v1313_v36, %v1258_v41 }
 0x15a   :  { %1707 = vst [vmem:[#allocation8 + $0xb0] sm:$0xff] %v1659_v46  }
 0x15c   :  { %v553_v48 = vpop.f32.mrb[32].mxu0  ;;  %v2220_v49 = vpop.f32.mrb[32].mxu1 }
 0x15d   :  { %v1195_v50 = vadd.f32 %v1194_v40, %v553_v48  ;;  %v1259_v51 = vmul.f32 %v553_v48, %v553_v48  ;;  %v1800_v52 = vpop.f32.mrb[33].mxu0  ;;  %v1860_v54 = vpop.f32.mrb[33].mxu1 }
 0x15e   :  { %v556_v55 = vpop.f32.mrb[34].mxu0  ;;  %v2222_v57 = vpop.f32.mrb[34].mxu1 }
 0x15f   :  { %v1315_v58 = vadd.f32 %v1314_v47, %v1259_v51  ;;  %v1589_v60 = vpack.c.bf16 %v556_v55, %v553_v48  ;;  %v1196_v61 = vadd.f32 %v1195_v50, %v556_v55  ;;  %v1260_v62 = vmul.f32 %v556_v55, %v556_v55  ;;  %v1801_v0 = vpop.f32.mrb[35].mxu0  ;;  %v1861_v1 = vpop.f32.mrb[35].mxu1 }
 0x160   :  { %v1664_v2 = vpack.c.bf16 %v2222_v57, %v2220_v49 }
 0x161   :  { %1693 = vst [vmem:[#allocation8 + $0x40] sm:$0xff] %v1589_v60   ;;  %v1316_v3 = vadd.f32 %v1315_v58, %v1260_v62 }
 0x162   :  { %1708 = vst [vmem:[#allocation8 + $0xb8] sm:$0xff] %v1664_v2  }
 0x164   :  { %v561_v4 = vpop.f32.mrb[36].mxu0  ;;  %v2226_v6 = vpop.f32.mrb[36].mxu1 }
 0x165   :  { %v1197_v7 = vadd.f32 %v1196_v61, %v561_v4  ;;  %v1261_v8 = vmul.f32 %v561_v4, %v561_v4  ;;  %v1804_v9 = vpop.f32.mrb[37].mxu0  ;;  %v1864_v12 = vpop.f32.mrb[37].mxu1 }
 0x166   :  { %v564_v13 = vpop.f32.mrb[38].mxu0  ;;  %v2228_v14 = vpop.f32.mrb[38].mxu1 }
 0x167   :  { %v1317_v15 = vadd.f32 %v1316_v3, %v1261_v8  ;;  %v1594_v16 = vpack.c.bf16 %v564_v13, %v561_v4  ;;  %v1198_v18 = vadd.f32 %v1197_v7, %v564_v13  ;;  %v1262_v19 = vmul.f32 %v564_v13, %v564_v13  ;;  %v1805_v20 = vpop.f32.mrb[39].mxu0  ;;  %v1865_v22 = vpop.f32.mrb[39].mxu1 }
 0x168   :  { %v1669_v23 = vpack.c.bf16 %v2228_v14, %v2226_v6 }
 0x169   :  { %1694 = vst [vmem:[#allocation8 + $0x48] sm:$0xff] %v1594_v16   ;;  %v1318_v24 = vadd.f32 %v1317_v15, %v1262_v19 }
 0x16a   :  { %1709 = vst [vmem:[#allocation8 + $0xc0] sm:$0xff] %v1669_v23  }
 0x16c   :  { %v569_v25 = vpop.f32.mrb[40].mxu0  ;;  %v2232_v26 = vpop.f32.mrb[40].mxu1 }
 0x16d   :  { %v1199_v28 = vadd.f32 %v1198_v18, %v569_v25  ;;  %v1263_v30 = vmul.f32 %v569_v25, %v569_v25  ;;  %v1808_v31 = vpop.f32.mrb[41].mxu0  ;;  %v1868_v32 = vpop.f32.mrb[41].mxu1 }
 0x16e   :  { %v572_v33 = vpop.f32.mrb[42].mxu0  ;;  %v2234_v34 = vpop.f32.mrb[42].mxu1 }
 0x16f   :  { %v1319_v36 = vadd.f32 %v1318_v24, %v1263_v30  ;;  %v1599_v38 = vpack.c.bf16 %v572_v33, %v569_v25  ;;  %v1200_v40 = vadd.f32 %v1199_v28, %v572_v33  ;;  %v1264_v41 = vmul.f32 %v572_v33, %v572_v33  ;;  %v1809_v42 = vpop.f32.mrb[43].mxu0  ;;  %v1869_v43 = vpop.f32.mrb[43].mxu1 }
 0x170   :  { %v1674_v46 = vpack.c.bf16 %v2234_v34, %v2232_v26 }
 0x171   :  { %1695 = vst [vmem:[#allocation8 + $0x50] sm:$0xff] %v1599_v38   ;;  %v1320_v47 = vadd.f32 %v1319_v36, %v1264_v41 }
 0x172   :  { %1710 = vst [vmem:[#allocation8 + $0xc8] sm:$0xff] %v1674_v46  }
 0x174   :  { %v577_v48 = vpop.f32.mrb[44].mxu0  ;;  %v2238_v50 = vpop.f32.mrb[44].mxu1 }
 0x175   :  { %v1201_v51 = vadd.f32 %v1200_v40, %v577_v48  ;;  %v1265_v52 = vmul.f32 %v577_v48, %v577_v48  ;;  %v1812_v54 = vpop.f32.mrb[45].mxu0  ;;  %v1872_v55 = vpop.f32.mrb[45].mxu1 }
 0x176   :  { %v580_v58 = vpop.f32.mrb[46].mxu0  ;;  %v2240_v60 = vpop.f32.mrb[46].mxu1 }
 0x177   :  { %v1321_v61 = vadd.f32 %v1320_v47, %v1265_v52  ;;  %v1604_v62 = vpack.c.bf16 %v580_v58, %v577_v48  ;;  %v1202_v0 = vadd.f32 %v1201_v51, %v580_v58  ;;  %v1266_v1 = vmul.f32 %v580_v58, %v580_v58  ;;  %v1813_v2 = vpop.f32.mrb[47].mxu0  ;;  %v1873_v3 = vpop.f32.mrb[47].mxu1 }
 0x178   :  { %v1679_v4 = vpack.c.bf16 %v2240_v60, %v2238_v50 }
 0x179   :  { %1696 = vst [vmem:[#allocation8 + $0x58] sm:$0xff] %v1604_v62   ;;  %v1322_v7 = vadd.f32 %v1321_v61, %v1266_v1 }
 0x17a   :  { %1711 = vst [vmem:[#allocation8 + $0xd0] sm:$0xff] %v1679_v4  }
 0x17c   :  { %v585_v8 = vpop.f32.mrb[48].mxu0  ;;  %v2244_v9 = vpop.f32.mrb[48].mxu1 }
 0x17d   :  { %v1203_v12 = vadd.f32 %v1202_v0, %v585_v8  ;;  %v1267_v13 = vmul.f32 %v585_v8, %v585_v8  ;;  %v1816_v15 = vpop.f32.mrb[49].mxu0  ;;  %v1876_v16 = vpop.f32.mrb[49].mxu1 }
 0x17e   :  { %v588_v18 = vpop.f32.mrb[50].mxu0  ;;  %v2246_v19 = vpop.f32.mrb[50].mxu1 }
 0x17f   :  { %v1323_v20 = vadd.f32 %v1322_v7, %v1267_v13  ;;  %v1609_v22 = vpack.c.bf16 %v588_v18, %v585_v8  ;;  %v1204_v23 = vadd.f32 %v1203_v12, %v588_v18  ;;  %v1268_v24 = vmul.f32 %v588_v18, %v588_v18  ;;  %v1817_v25 = vpop.f32.mrb[51].mxu0  ;;  %v1877_v28 = vpop.f32.mrb[51].mxu1 }
 0x180   :  { %v1684_v30 = vpack.c.bf16 %v2246_v19, %v2244_v9  ;;  %v1273_v13 = vmul.f32 %v2172_v39, %v2172_v39 }
 0x181   :  { %1697 = vst [vmem:[#allocation8 + $0x60] sm:$0xff] %v1609_v22   ;;  %v1324_v31 = vadd.f32 %v1323_v20, %v1268_v24 }
 0x182   :  { %1712 = vst [vmem:[#allocation8 + $0xd8] sm:$0xff] %v1684_v30  }
 0x184   :  { %v593_v32 = vpop.f32.mrb[52].mxu0  ;;  %v2250_v33 = vpop.f32.mrb[52].mxu1 }
 0x185   :  { %v1205_v36 = vadd.f32 %v1204_v23, %v593_v32  ;;  %v1269_v38 = vmul.f32 %v593_v32, %v593_v32  ;;  %v1820_v40 = vpop.f32.mrb[53].mxu0  ;;  %v1545_v41 = vpack.c.bf16 %v2250_v33, %v2250_v33  ;;  %v1880_v42 = vpop.f32.mrb[53].mxu1 }
 0x186   :  { %v596_v43 = vpop.f32.mrb[54].mxu0  ;;  %v716_v46 = vpop.f32.mrb[54].mxu1 }
 0x187   :  { %v1325_v47 = vadd.f32 %v1324_v31, %v1269_v38  ;;  %v1614_v48 = vpack.c.bf16 %v596_v43, %v593_v32  ;;  %v1206_v51 = vadd.f32 %v1205_v36, %v596_v43  ;;  %v1270_v52 = vmul.f32 %v596_v43, %v596_v43  ;;  %v1821_v54 = vpop.f32.mrb[55].mxu0  ;;  %1178 = vst [vmem:[#allocation8 + $0xe0] sm:$0xf] %v1545_v41  ;;  %v1881_v55 = vpop.f32.mrb[55].mxu1 }
 0x189   :  { %1698 = vst [vmem:[#allocation8 + $0x68] sm:$0xff] %v1614_v48   ;;  %v1326_v58 = vadd.f32 %v1325_v47, %v1270_v52 }
 0x18c   :  { %v601_v61 = vpop.f32.mrb[56].mxu0 }
 0x18d   :  { %v1207_v62 = vadd.f32 %v1206_v51, %v601_v61  ;;  %v1271_v0 = vmul.f32 %v601_v61, %v601_v61  ;;  %v1824_v1 = vpop.f32.mrb[57].mxu0 }
 0x18e   :  { %v604_v2 = vpop.f32.mrb[58].mxu0 }
 0x18f   :  { %v1327_v3 = vadd.f32 %v1326_v58, %v1271_v0  ;;  %v1619_v4 = vpack.c.bf16 %v604_v2, %v601_v61  ;;  %v1208_v7 = vadd.f32 %v1207_v62, %v604_v2  ;;  %v1272_v8 = vmul.f32 %v604_v2, %v604_v2  ;;  %v1825_v12 = vpop.f32.mrb[59].mxu0 }
 0x191   :  { %1699 = vst [vmem:[#allocation8 + $0x70] sm:$0xff] %v1619_v4   ;;  %v1209_v15 = vadd.f32 %v1208_v7, %v2172_v39  ;;  %v1328_v16 = vadd.f32 %v1327_v3, %v1272_v8 }
 0x192   :  { %1998 = shalt.err (!%p1995_p6)
}
 0x193   :  { %s1999_s14 = scalar_lea.hbm %s2364_s2, 3648 }
 0x194   :  { %p2000_p7 = scmp.ne.s32.totalorder %s2364_s2, %s1999_s14  ;;  %p2003_p8 = scmp.lt.u32.totalorder %s1999_s14, %s2364_s2 }
 0x196   :  { %p2005_p9 = pnand %p2003_p8, %p2000_p7 }
 0x198   :  { %2008 = shalt.err (!%p2005_p9)
}
 0x199   :  { %1374 = dma.vmem_to_hbm [thread:$0]  %s1369_s10, 3648, %s2364_s2, [#allocation5], %s2040_s22, %s2040_s22, %s2041_s23   ;;  %v1274_v39 = vmul.f32 %v2174_v44, %v2174_v44  ;;  %v1210_v18 = vadd.f32 %v1209_v15, %v2174_v44  ;;  %v1329_v20 = vadd.f32 %v1328_v16, %v1273_v13  ;;  %v1275_v22 = vmul.f32 %v2178_v53, %v2178_v53 }
 0x19a   :  { %v1276_v25 = vmul.f32 %v2180_v59, %v2180_v59  ;;  %v1277_v31 = vmul.f32 %v2184_v5, %v2184_v5  ;;  %v1278_v44 = vmul.f32 %v2186_v11, %v2186_v11  ;;  %v1287_v3 = vmul.f32 %v2214_v29, %v2214_v29  ;;  %s2046_s2 = smov [#allocation9]  }
 0x19b   :  { %v1211_v23 = vadd.f32 %v1210_v18, %v2178_v53  ;;  %v1330_v24 = vadd.f32 %v1329_v20, %v1274_v39  ;;  %v1279_v53 = vmul.f32 %v2190_v21, %v2190_v21  ;;  %v1288_v8 = vmul.f32 %v2216_v35, %v2216_v35  ;;  %s1381_s21 = sshll.u32 %s2046_s2, 4  ;;  %s1382_s21 = int_to_ptr.vmem [resolvable:$true] %s1381_s21 }
 0x19c   :  { %v1289_v13 = vmul.f32 %v2220_v49, %v2220_v49  ;;  %v1290_v16 = vmul.f32 %v2222_v57, %v2222_v57  ;;  %v1291_v18 = vmul.f32 %v2226_v6, %v2226_v6  ;;  %s2009_s22 = scalar_lea.vmem %s1382_s21, 128  ;;  %p2014_p11 = scmp.lt.s32.totalorder %s1382_s21, %s1382_s21 }
 0x19d   :  { %v1212_v28 = vadd.f32 %v1211_v23, %v2180_v59  ;;  %v1331_v30 = vadd.f32 %v1330_v24, %v1275_v22  ;;  %v1280_v59 = vmul.f32 %v2192_v27, %v2192_v27  ;;  %v1292_v22 = vmul.f32 %v2228_v14, %v2228_v14  ;;  %p2010_p10 = scmp.ne.s32.totalorder %s1382_s21, %s2009_s22  ;;  %p2015_p12 = scmp.lt.s32.totalorder %s2009_s22, %s2009_s22 }
 0x19e   :  { %v1293_v24 = vmul.f32 %v2232_v26, %v2232_v26 }
 0x19f   :  { %v1213_v32 = vadd.f32 %v1212_v28, %v2184_v5  ;;  %v1332_v36 = vadd.f32 %v1331_v30, %v1276_v25  ;;  %v1281_v5 = vmul.f32 %v2196_v37, %v2196_v37  ;;  %v1294_v28 = vmul.f32 %v2234_v34, %v2234_v34  ;;  %p2016_p13 = por %p2015_p12, %p2014_p11 }
 0x1a1   :  { %v1214_v38 = vadd.f32 %v1213_v32, %v2186_v11  ;;  %v1333_v40 = vadd.f32 %v1332_v36, %v1277_v31  ;;  %v1282_v11 = vmul.f32 %v2198_v45, %v2198_v45  ;;  %v1295_v31 = vmul.f32 %v2238_v50, %v2238_v50  ;;  %p2017_p0 = pnand %p2016_p13, %p2010_p10 }
 0x1a2   :  { %v1296_v36 = vmul.f32 %v2240_v60, %v2240_v60 }
 0x1a3   :  { %v1215_v41 = vadd.f32 %v1214_v38, %v2190_v21  ;;  %v1334_v42 = vadd.f32 %v1333_v40, %v1278_v44  ;;  %v1283_v21 = vmul.f32 %v2202_v56, %v2202_v56  ;;  %v1297_v38 = vmul.f32 %v2244_v9, %v2244_v9 }
 0x1a5   :  { %v1335_v43 = vadd.f32 %v1334_v42, %v1279_v53  ;;  %v1216_v46 = vadd.f32 %v1215_v41, %v2192_v27  ;;  %v1284_v27 = vmul.f32 %v2204_v63, %v2204_v63  ;;  %v1298_v53 = vmul.f32 %v2246_v19, %v2246_v19 }
 0x1a7   :  { %v1217_v47 = vadd.f32 %v1216_v46, %v2196_v37  ;;  %v1336_v48 = vadd.f32 %v1335_v43, %v1280_v59  ;;  %v1285_v37 = vmul.f32 %v2208_v10, %v2208_v10 }
 0x1a9   :  { %v1218_v51 = vadd.f32 %v1217_v47, %v2198_v45  ;;  %v1337_v52 = vadd.f32 %v1336_v48, %v1281_v5  ;;  %v1286_v45 = vmul.f32 %v2210_v17, %v2210_v17 }
 0x1ab   :  { %v1219_v54 = vadd.f32 %v1218_v51, %v2202_v56  ;;  %v1338_v55 = vadd.f32 %v1337_v52, %v1282_v11 }
 0x1ad   :  { %v1220_v58 = vadd.f32 %v1219_v54, %v2204_v63  ;;  %v1339_v61 = vadd.f32 %v1338_v55, %v1283_v21 }
 0x1af   :  { %v1221_v62 = vadd.f32 %v1220_v58, %v2208_v10  ;;  %v1340_v0 = vadd.f32 %v1339_v61, %v1284_v27 }
 0x1b1   :  { %v1222_v1 = vadd.f32 %v1221_v62, %v2210_v17  ;;  %v1341_v2 = vadd.f32 %v1340_v0, %v1285_v37 }
 0x1b3   :  { %v1223_v56 = vadd.f32 %v1222_v1, %v2214_v29  ;;  %v1342_v4 = vadd.f32 %v1341_v2, %v1286_v45 }
 0x1b5   :  { %v1343_v63 = vadd.f32 %v1342_v4, %v1287_v3  ;;  %v1224_v7 = vadd.f32 %v1223_v56, %v2216_v35 }
 0x1b7   :  { %v1344_v10 = vadd.f32 %v1343_v63, %v1288_v8  ;;  %v1225_v12 = vadd.f32 %v1224_v7, %v2220_v49 }
 0x1b9   :  { %v1345_v17 = vadd.f32 %v1344_v10, %v1289_v13  ;;  %v1226_v15 = vadd.f32 %v1225_v12, %v2222_v57 }
 0x1bb   :  { %v1346_v29 = vadd.f32 %v1345_v17, %v1290_v16  ;;  %v1227_v39 = vadd.f32 %v1226_v15, %v2226_v6 }
 0x1bd   :  { %v1347_v20 = vadd.f32 %v1346_v29, %v1291_v18  ;;  %v1228_v35 = vadd.f32 %v1227_v39, %v2228_v14 }
 0x1bf   :  { %v1348_v23 = vadd.f32 %v1347_v20, %v1292_v22  ;;  %v1229_v49 = vadd.f32 %v1228_v35, %v2232_v26 }
 0x1c1   :  { %v1349_v25 = vadd.f32 %v1348_v23, %v1293_v24  ;;  %v1230_v57 = vadd.f32 %v1229_v49, %v2234_v34 }
 0x1c3   :  { %v1350_v30 = vadd.f32 %v1349_v25, %v1294_v28  ;;  %v1231_v6 = vadd.f32 %v1230_v57, %v2238_v50  ;;  %v1299_v50 = vmul.f32 %v2250_v33, %v2250_v33 }
 0x1c5   :  { %v1351_v32 = vadd.f32 %v1350_v30, %v1295_v31  ;;  %v1232_v14 = vadd.f32 %v1231_v6, %v2240_v60 }
 0x1c7   :  { %v1352_v44 = vadd.f32 %v1351_v32, %v1296_v36  ;;  %v1233_v26 = vadd.f32 %v1232_v14, %v2244_v9 }
 0x1c9   :  { %v1353_v40 = vadd.f32 %v1352_v44, %v1297_v38  ;;  %v1234_v34 = vadd.f32 %v1233_v26, %v2246_v19 }
 0x1cb   :  { %v1354_v41 = vadd.f32 %v1353_v40, %v1298_v53  ;;  %v1235_v42 = vadd.f32 %v1234_v34, %v2250_v33 }
 0x1cd   :  { %v1236_v59 = vrot.slane %v1235_v42, 4  ;;  %v1355_v60 = vadd.f32 %v1354_v41, %v1299_v50 }
 0x1cf   :  { %v1237_v43 = vadd.f32 %v1236_v59, %v1235_v42  ;;  %v1356_v46 = vrot.slane %v1355_v60, 4 }
 0x1d1   :  { %v1238_v5 = vrot.slane %v1237_v43, 2  ;;  %v1357_v47 = vadd.f32 %v1356_v46, %v1355_v60 }
 0x1d3   :  { %v1239_v48 = vadd.f32 %v1238_v5, %v1237_v43  ;;  %v1358_v9 = vrot.slane %v1357_v47, 2 }
 0x1d5   :  { %v1240_v11 = vrot.slane %v1239_v48, 1  ;;  %v1359_v51 = vadd.f32 %v1358_v9, %v1357_v47 }
 0x1d7   :  { %v1241_v52 = vadd.f32 %v1240_v11, %v1239_v48  ;;  %v1360_v19 = vrot.slane %v1359_v51, 1 }
 0x1d9   :  { %1242 = vst [vmem:[#allocation9] sm:$0x1] %v1241_v52  ;;  %v1361_v21 = vadd.f32 %v1360_v19, %v1359_v51 }
 0x1db   :  { %1362 = vst [vmem:[#allocation9 + $0x1] sm:$0x1] %v1361_v21 }
 0x1dc   :  { %2020 = shalt.err (!%p2017_p0)
}
 0x1dd   :  { %s2021_s25 = scalar_lea.hbm %s2365_s3, 128 }
 0x1de   :  { %p2022_p1 = scmp.ne.s32.totalorder %s2365_s3, %s2021_s25  ;;  %p2025_p2 = scmp.lt.u32.totalorder %s2021_s25, %s2365_s3 }
 0x1e0   :  { %p2027_p3 = pnand %p2025_p2, %p2022_p1 }
 0x1e2   :  { %2030 = shalt.err (!%p2027_p3)
}
 0x1e3   :  { %1384 = dma.vmem_to_hbm [thread:$0]  %s1382_s21, 128, %s2365_s3, [#allocation10]  }
 0x1e4   :  { %2035 = dma.done.wait [#allocation5], 3648  }
 0x1e5   :  { %2036 = vsyncadd [#allocation5], 4294963648 }
 0x1e6   :  { %2037 = dma.done.wait [#allocation10], 128  }
 0x1e7   :  { %2038 = vsyncadd [#allocation10], 4294967168 }
 0x1e8   :  { %1391 = vsyncpa [#allocation4], 1 }
 0x1e9   :  { %1392 = vsyncpa [#allocation7], 1 }
 0x1ea   :  { %1393 = vsyncpa [#allocation5], 1 }
 0x1eb   :  { %1394 = vsyncpa [#allocation10], 1 }

</bundles_post_ra>
